<compile_context>
chip_gen: v6e
topology: v6e:2x2x1
jax: 0.10.0
libtpu: 0.0.40
codegen_flags: <defaults>
</compile_context>

<pallas_src>
import math

import jax
import jax.numpy as jnp
from jax import lax
from jax.experimental import pallas as pl
from jax.experimental.pallas import tpu as pltpu


# ----------------------------- helpers ---------------------------------------
def _round_up(v, mult):
    return ((v + mult - 1) // mult) * mult


def _round_down(v, mult):
    return (v // mult) * mult


def _default_vmem_limit_bytes():
    """~0.75x physical VMEM: ~96 MiB on v5e/v6e (128 MiB), 48 MiB on v7x (64 MiB)."""
    try:
        cap = int(pltpu.get_tpu_info().vmem_capacity_bytes)
    except Exception:
        cap = 64 * 1024 * 1024  # conservative (v7x-sized) fallback
    return min((3 * cap) // 4, 112 * 1024 * 1024)


# ----------------------------- Pallas kernel --------------------------------
def _make_sample_head_kernel(compute_dtype, k_total, tk, mask_k):
    """Kernel for one (batch-tile, K-tile) grid step.

    x_ref: (BM, TK) activations tile (native dtype; batch on sublanes, K on lanes)
    w_ref: (1, TK)  weight slice
    b_ref: (1,)     bias scalar (SMEM)
    o_ref: (1, BM)  y^T tile (batch on LANES -> lane-dense store)
    acc_ref: (1, BM) f32 accumulator scratch, persistent across the K axis.
    """

    def kernel(x_ref, w_ref, b_ref, o_ref, acc_ref):
        kk = pl.program_id(1)

        @pl.when(kk == 0)
        def _init():
            acc_ref[...] = jnp.zeros_like(acc_ref)

        x_t = x_ref[...]
        w_t = w_ref[...]

        if mask_k:
            # Edge K block: zero BOTH operands in the padded lanes so stale
            # VMEM contents (possibly NaN bit patterns) cannot contaminate
            # the accumulation (0 * NaN would still be NaN).
            lane = lax.broadcasted_iota(jnp.int32, (1, tk), 1)
            valid = (kk * tk + lane) < k_total
            x_t = jnp.where(valid, x_t, jnp.zeros_like(x_t))
            w_t = jnp.where(valid, w_t, jnp.zeros_like(w_t))

        if compute_dtype is not None:
            # In-register cast (free VPU filler) -> HBM streams native dtype,
            # no separate wrapper-side cast pass over the activations.
            x_t = x_t.astype(compute_dtype)
            w_t = w_t.astype(compute_dtype)
            precision = None
        else:
            precision = lax.Precision.HIGHEST  # true f32 GEMV

        # y^T = w @ x^T : contract over K on both operands (rhs-transposed
        # form handled directly by the MXU; no explicit transpose of x).
        acc_ref[...] += lax.dot_general(
            w_t,
            x_t,
            dimension_numbers=(((1,), (1,)), ((), ())),
            preferred_element_type=jnp.float32,
            precision=precision,
        )

        @pl.when(kk == pl.num_programs(1) - 1)
        def _finalize():
            o_ref[...] = (acc_ref[...] + b_ref[0]).astype(o_ref.dtype)

    return kernel


# ----------------------------- wrapper ---------------------------------------
def sample_head_linear(
    x,
    w,                                # PyTorch layout: (out_size=1, input_size)
    b,                                # (1,)
    *,
    compute_dtype=jnp.bfloat16,       # None -> exact f32 path
    target_tile_bytes=None,           # per-buffer byte target for tiling
    vmem_limit_bytes=None,            # None -> generation-aware default
    x_buffer_count=2,                 # sweep knob: pl.Buffered depth for x
):
    """Computes (x @ w.T + b).squeeze(-1) with a lane-dense Pallas GEMV kernel."""
    k = x.shape[-1]
    assert w.shape == (1, k)
    lead_shape = x.shape[:-1]

    x2 = x.reshape(-1, k)             # stream in NATIVE dtype (no cast pass)
    m = x2.shape[0]
    x_itemsize = jnp.dtype(x2.dtype).itemsize
    out_itemsize = jnp.dtype(x.dtype).itemsize

    if vmem_limit_bytes is None:
        vmem_limit_bytes = _default_vmem_limit_bytes()
    if target_tile_bytes is None:
        # ~4-8 MiB per buffer amortizes the ~0.35us/step overhead (85%+ of
        # HBM roofline) while leaving headroom for double-buffering.
        target_tile_bytes = min(8 * 1024 * 1024, vmem_limit_bytes // 4)

    # ---- batch tile (bm): byte-targeted, lane-aligned ----------------------
    m_pad = _round_up(m, 128)
    if m < 128:
        bm = m                                   # single full-extent block
    else:
        bm = _round_down(target_tile_bytes // (k * x_itemsize), 128)
        bm = max(128, min(bm, m_pad, 2048))
        if m >= 256:
            # Guarantee >= 2 batch-grid steps so ("parallel", ...) can shard
            # the stream across both TensorCores on v7x (harmless elsewhere).
            bm = min(bm, _round_up(pl.cdiv(m, 2), 128))

    # ---- K tile (tk): only tile when a full-K x tile exceeds the budget ----
    if bm * k * x_itemsize <= target_tile_bytes:
        tk = k
    else:
        tk = _round_down(target_tile_bytes // (bm * x_itemsize), 128)
        tk = max(128, tk)
        if tk >= k:
            tk = k
    k_steps = pl.cdiv(k, tk)
    mask_k = (k_steps > 1) and (k % tk != 0)

    grid = (pl.cdiv(m, bm), k_steps)             # reduction (K) axis last

    bc = b.reshape(1).astype(jnp.float32)        # scalar bias -> SMEM

    x_index_map = lambda i, kk: (i, kk)
    if x_buffer_count != 2:
        try:
            x_spec = pl.BlockSpec((bm, tk), x_index_map,
                                  pipeline_mode=pl.Buffered(x_buffer_count))
        except TypeError:                        # BlockSpec w/o pipeline_mode
            x_spec = pl.BlockSpec((bm, tk), x_index_map)
    else:
        x_spec = pl.BlockSpec((bm, tk), x_index_map)

    kernel = _make_sample_head_kernel(compute_dtype, k, tk, mask_k)

    cost = pl.CostEstimate(
        flops=2 * m * k,
        transcendentals=0,
        bytes_accessed=(m * k * x_itemsize
                        + k * jnp.dtype(w.dtype).itemsize
                        + 4
                        + m * out_itemsize),
    )

    y_t = pl.pallas_call(
        kernel,
        out_shape=jax.ShapeDtypeStruct((1, m), x.dtype),
        grid_spec=pltpu.PrefetchScalarGridSpec(
            num_scalar_prefetch=0,
            grid=grid,
            in_specs=[
                x_spec,                                          # activations
                pl.BlockSpec((1, tk), lambda i, kk: (0, kk)),    # weight slice
                pl.BlockSpec(memory_space=pltpu.MemorySpace.SMEM),  # bias
            ],
            # lane-dense output tile: batch lives on the lane axis; constant
            # across the K axis (accumulator pattern).
            out_specs=pl.BlockSpec((1, bm), lambda i, kk: (0, i)),
            scratch_shapes=[pltpu.VMEM((1, bm), jnp.float32)],
        ),
        compiler_params=pltpu.CompilerParams(
            dimension_semantics=("parallel", "arbitrary"),
            vmem_limit_bytes=vmem_limit_bytes,
        ),
        cost_estimate=cost,
    )(x2, w, bc)

    return y_t.reshape(lead_shape)


# ----------------------------- SampleDist / SampleHead -----------------------
def hna(samples, m=15):
    """Plain-JAX port of the HNA entropy estimator (forward() itself only
    constructs the distribution; entropy is not part of the Pallas kernel)."""
    samples = jnp.sort(samples, axis=-1)
    n = samples.shape[-1]
    summ = 0.0
    for i in range(n):
        c = 1 if (i < m - 1 or i > n - m - 1) else 2
        diff = samples[..., min(i + m, n - 1)] - samples[..., max(i - m, 0)]
        diff = jnp.maximum(diff, 1e-8)
        summ = summ + (1.0 / n) * jnp.log(n / (c * m) * diff)
    return summ[..., None]


class SampleDist:
    """Mirror of the torch SampleDist: carries the samples; .mean == samples."""

    def __init__(self, samples):
        self.samples = samples

    @property
    def mean(self):
        return self.samples

    def entropy(self):
        return hna(self.samples)

    def log_prob(self, x):
        raise NotImplementedError


class SampleHead:
    """depth=0 SampleHead: Linear(input_size, 1) -> squeeze(-1) -> SampleDist."""

    def __init__(self, input_size, out_size=1, *, key, depth=0):
        assert out_size == 1
        # TODO(synk): depth>0 hidden MLP layers not implemented (spec default depth=0).
        assert depth == 0
        kw, kb = jax.random.split(key)
        bound = 1.0 / math.sqrt(input_size)
        # Keep PyTorch weight layout (out_size, input_size); no transpose needed
        # because the kernel computes y^T = W @ x^T.
        self.w = jax.random.uniform(
            kw, (out_size, input_size), jnp.float32, -bound, bound
        )
        self.b = jax.random.uniform(kb, (out_size,), jnp.float32, -bound, bound)

    def __call__(self, x):
        y = sample_head_linear(x, self.w, self.b)
        return SampleDist(y)


# ----------------------------- reference check -------------------------------
def _reference(x, w, b):
    return (x @ w.T + b)[..., 0]


if __name__ == "__main__":
    key = jax.random.PRNGKey(0)
    k_x, k_params, k_x2 = jax.random.split(key, 3)

    # ---- Case 1: module-like small shapes (batch, n_samples, input_size) ----
    batch, n_samples, input_size = 2, 64, 32
    x = jax.random.normal(k_x, (batch, n_samples, input_size), jnp.float32)

    head = SampleHead(input_size, 1, key=k_params)
    dist = head(x)
    y = jax.block_until_ready(dist.mean)

    y_ref = _reference(x, head.w, head.b)
    assert y.shape == (batch, n_samples)
    # bf16 in-kernel compute with f32 accumulation -> relaxed tolerance.
    max_err = float(jnp.max(jnp.abs(y - y_ref)))
    assert jnp.allclose(y, y_ref, atol=5e-2, rtol=5e-2), max_err

    # Exact f32 path (compute_dtype=None) -> tight tolerance.
    y_f32 = jax.block_until_ready(
        sample_head_linear(x, head.w, head.b, compute_dtype=None)
    )
    assert jnp.allclose(y_f32, y_ref, atol=1e-5, rtol=1e-5), float(
        jnp.max(jnp.abs(y_f32 - y_ref))
    )

    ent = dist.entropy()
    assert ent.shape == (batch, 1)

    # ---- Case 2: exercise multi-step batch grid, K tiling and edge masking --
    # (m=500 not a multiple of 128, K=200 not a multiple of 128; a tiny byte
    #  target forces bm=128, tk=128 -> padded edge blocks on both axes.)
    k2 = 200
    x2 = jax.random.normal(k_x2, (2, 250, k2), jnp.float32)
    w2 = jax.random.normal(k_params, (1, k2), jnp.float32) * 0.05
    b2 = jnp.array([0.3], jnp.float32)
    y2 = jax.block_until_ready(
        sample_head_linear(
            x2, w2, b2, compute_dtype=None, target_tile_bytes=64 * 1024
        )
    )
    y2_ref = _reference(x2, w2, b2)
    assert y2.shape == (2, 250)
    assert jnp.allclose(y2, y2_ref, atol=1e-4, rtol=1e-4), float(
        jnp.max(jnp.abs(y2 - y2_ref))
    )

    print("KERNEL_OK")
</pallas_src>

<mosaic_0001>
module attributes {stable_mosaic.version = 11 : i64} {
  func.func @kernel(%arg0: i32, %arg1: i32, %arg2: memref<128x32xf32, #tpu.memory_space<vmem>>, %arg3: memref<1x32xf32, #tpu.memory_space<vmem>>, %arg4: memref<1xf32, #tpu.memory_space<smem>>, %arg5: memref<1x128xf32, #tpu.memory_space<vmem>>, %arg6: memref<1x128xf32, #tpu.memory_space<vmem>>) attributes {dimension_semantics = [#tpu.dimension_semantics<parallel>, #tpu.dimension_semantics<arbitrary>], iteration_bounds = array<i64: 1, 1>, scalar_prefetch = 0 : i64, scratch_operands = 1 : i64, tpu.core_type = #tpu.core_type<tc>, window_params = [{transform_indices = @transform_0, window_bounds = array<i64: 128, 32>}, {transform_indices = @transform_1, window_bounds = array<i64: 1, 32>}, {transform_indices = @transform_2, window_bounds = array<i64: 1>}, {transform_indices = @transform_3, window_bounds = array<i64: 1, 128>}]} {
    %c0_i32 = arith.constant 0 : i32
    %0 = arith.cmpi eq, %arg1, %c0_i32 : i32
    %1 = arith.extui %0 : i1 to i32
    %c0_i32_0 = arith.constant 0 : i32
    %2 = arith.cmpi ne, %1, %c0_i32_0 : i32
    scf.if %2 {
      %cst_10 = arith.constant 0.000000e+00 : f32
      %14 = vector.broadcast %cst_10 : f32 to vector<1x128xf32>
      %c0_11 = arith.constant 0 : index
      %c0_12 = arith.constant 0 : index
      %15 = vector.load %arg6[%c0_11, %c0_12] : memref<1x128xf32, #tpu.memory_space<vmem>>, vector<1x128xf32>
      tpu.vector_store %arg6[%c0_11, %c0_12], %14 {strides = array<i32>} : memref<1x128xf32, #tpu.memory_space<vmem>>, vector<1x128xf32>,
    } else {
    }
    %c0 = arith.constant 0 : index
    %c0_1 = arith.constant 0 : index
    %3 = vector.load %arg2[%c0, %c0_1] : memref<128x32xf32, #tpu.memory_space<vmem>>, vector<128x32xf32>
    %c0_2 = arith.constant 0 : index
    %c0_3 = arith.constant 0 : index
    %4 = vector.load %arg3[%c0_2, %c0_3] : memref<1x32xf32, #tpu.memory_space<vmem>>, vector<1x32xf32>
    %5 = arith.truncf %3 : vector<128x32xf32> to vector<128x32xbf16>
    %6 = arith.truncf %4 : vector<1x32xf32> to vector<1x32xbf16>
    %c0_4 = arith.constant 0 : index
    %c0_5 = arith.constant 0 : index
    %7 = vector.load %arg6[%c0_4, %c0_5] : memref<1x128xf32, #tpu.memory_space<vmem>>, vector<1x128xf32>
    %cst = arith.constant dense<0.000000e+00> : vector<1x128xf32>
    %8 = tpu.matmul %6, %5, %cst {dimension_numbers = #tpu.dot_dimension_numbers<[1], [1], [0], [0], [0, 0, 1, 0], [], []>} : vector<1x32xbf16>, vector<128x32xbf16>, vector<1x128xf32> -> vector<1x128xf32>
    %9 = arith.addf %7, %8 : vector<1x128xf32>
    %c0_6 = arith.constant 0 : index
    %c0_7 = arith.constant 0 : index
    %10 = vector.load %arg6[%c0_6, %c0_7] : memref<1x128xf32, #tpu.memory_space<vmem>>, vector<1x128xf32>
    tpu.vector_store %arg6[%c0_6, %c0_7], %9 {strides = array<i32>} : memref<1x128xf32, #tpu.memory_space<vmem>>, vector<1x128xf32>,
    %c0_i32_8 = arith.constant 0 : i32
    %11 = arith.cmpi eq, %arg1, %c0_i32_8 : i32
    %12 = arith.extui %11 : i1 to i32
    %c0_i32_9 = arith.constant 0 : i32
    %13 = arith.cmpi ne, %12, %c0_i32_9 : i32
    scf.if %13 {
      %c0_10 = arith.constant 0 : index
      %c0_11 = arith.constant 0 : index
      %14 = vector.load %arg6[%c0_10, %c0_11] : memref<1x128xf32, #tpu.memory_space<vmem>>, vector<1x128xf32>
      %c0_12 = arith.constant 0 : index
      %15 = memref.load %arg4[%c0_12] : memref<1xf32, #tpu.memory_space<smem>>
      %16 = vector.broadcast %15 : f32 to vector<1x128xf32>
      %17 = arith.addf %14, %16 : vector<1x128xf32>
      %c0_13 = arith.constant 0 : index
      %c0_14 = arith.constant 0 : index
      %18 = vector.load %arg5[%c0_13, %c0_14] : memref<1x128xf32, #tpu.memory_space<vmem>>, vector<1x128xf32>
      tpu.vector_store %arg5[%c0_13, %c0_14], %17 {strides = array<i32>} : memref<1x128xf32, #tpu.memory_space<vmem>>, vector<1x128xf32>,
    } else {
    }
    return
  }
  func.func @transform_0(%arg0: i32, %arg1: i32) -> (i32, i32) {
    %c0_i32 = arith.constant 0 : i32
    return %arg0, %arg1 : i32, i32
  }
  func.func @transform_1(%arg0: i32, %arg1: i32) -> (i32, i32) {
    %c0_i32 = arith.constant 0 : i32
    %c0_i32_0 = arith.constant 0 : i32
    return %c0_i32, %arg1 : i32, i32
  }
  func.func @transform_2(%arg0: i32, %arg1: i32) -> i32 {
    %c0_i32 = arith.constant 0 : i32
    %c0_i32_0 = arith.constant 0 : i32
    return %c0_i32 : i32
  }
  func.func @transform_3(%arg0: i32, %arg1: i32) -> (i32, i32) {
    %c0_i32 = arith.constant 0 : i32
    %c0_i32_0 = arith.constant 0 : i32
    return %c0_i32, %arg0 : i32, i32
  }
}

</mosaic_0001>

<bundles_post_ra>
// kernel: tpu_custom_call.1
= control target key start
LH: loop header
LB: loop body
LE: loop exit
PB: predicated region body
PF: predicated region fallthrough
CT: control target
= control target key end

     0   :  { %vm49_vm0 = vcmask 261120   ;;  %v196_v2 = vmov 0.0   ;;  %vm197_vm1 = vmmov 0   ;;  %s285_s0 = inlined_call_operand.vmem [shape: f32[128,32], index: 0, kind: input, shape index: {}]   ;;  %s286_s1 = inlined_call_operand.vmem [shape: f32[1,32], index: 1, kind: input, shape index: {}]   ;;  %s287_s2 = inlined_call_operand.<no memory space> [shape: f32[1], index: 2, kind: input, shape index: {}]   ;;  %s288_s3 = inlined_call_operand.hbm [shape: f32[1,128], index: 3, kind: output, shape index: {}]  }
   0x1   :  { %v36_v0 = vld [vmem:[%s285_s0 + $0x70] sm:$0xff]  ;;  %v37_v1 = vld [vmem:[%s285_s0 + $0x78] sm:$0xff]  ;;  %151 = vmatprep.subr.bf16.mxu0 %v196_v2  ;;  %21 = vst [vmem:[#allocation2] sm:$0x1] %v196_v2  ;;  %167 = vmatprep.mubr.msk.bf16.mxu0 %vm197_vm1, %v196_v2  ;;  %v34_v4 = vld [vmem:[%s285_s0 + $0x60] sm:$0xff] }
   0x2   :  { %v46_v3 = vpack.c.bf16 %v37_v1, %v36_v0  ;;  %v35_v5 = vld [vmem:[%s285_s0 + $0x68] sm:$0xff] }
   0x3   :  { %v45_v7 = vpack.c.bf16 %v35_v5, %v34_v4 }
   0x4   :  { %v75_v6 = vsel %vm49_vm0, %v46_v3, 0 }
   0x5   :  { %152 = vmatpush3.bf16.xpose.msra.mxu0 %v75_v6 }
   0x6   :  { %153 = vmatprep.subr.bf16.mxu0 %v196_v2 }
   0x7   :  { %9 = vsyncpa [#allocation5], 0  ;;  %v72_v8 = vsel %vm49_vm0, %v45_v7, 0  ;;  %v32_v9 = vld [vmem:[%s285_s0 + $0x50] sm:$0xff]  ;;  %v33_v10 = vld [vmem:[%s285_s0 + $0x58] sm:$0xff]  ;;  %v124_v41 = vstv %s287_s2  ;;  %s198_s20 = smov [#allocation4]  }
   0x8   :  { %v44_v11 = vpack.c.bf16 %v33_v10, %v32_v9  ;;  %v30_v13 = vld [vmem:[%s285_s0 + $0x40] sm:$0xff]  ;;  %v31_v14 = vld [vmem:[%s285_s0 + $0x48] sm:$0xff]  ;;  %v28_v17 = vld [vmem:[%s285_s0 + $0x30] sm:$0xff]  ;;  %s133_s21 = sshll.u32 %s198_s20, 4  ;;  %s134_s21 = int_to_ptr.vmem [resolvable:$true] %s133_s21 }
   0x9   :  { %v43_v15 = vpack.c.bf16 %v31_v14, %v30_v13  ;;  %v29_v18 = vld [vmem:[%s285_s0 + $0x38] sm:$0xff]  ;;  %v26_v21 = vld [vmem:[%s285_s0 + $0x20] sm:$0xff]  ;;  %v27_v22 = vld [vmem:[%s285_s0 + $0x28] sm:$0xff]  ;;  %s178_s22 = scalar_lea.vmem %s134_s21, 32  ;;  %p179_p1 = scmp.lt.s32.totalorder %s134_s21, %s134_s21 }
   0xa   :  { %v69_v12 = vsel %vm49_vm0, %v44_v11, 0  ;;  %v42_v19 = vpack.c.bf16 %v29_v18, %v28_v17  ;;  %v41_v23 = vpack.c.bf16 %v27_v22, %v26_v21  ;;  %v24_v25 = vld [vmem:[%s285_s0 + $0x10] sm:$0xff]  ;;  %v25_v26 = vld [vmem:[%s285_s0 + $0x18] sm:$0xff]  ;;  %v22_v29 = vld [vmem:[%s285_s0] sm:$0xff] }
   0xb   :  { %v66_v16 = vsel %vm49_vm0, %v43_v15, 0  ;;  %v40_v27 = vpack.c.bf16 %v25_v26, %v24_v25  ;;  %v23_v30 = vld [vmem:[%s285_s0 + $0x8] sm:$0xff]  ;;  %v38_v33 = vld [vmem:[%s286_s1] sm:$0x1]  ;;  %s174_s1 = scalar_lea.vmem %s134_s21, 16 }
   0xc   :  { %v63_v20 = vsel %vm49_vm0, %v42_v19, 0  ;;  %v60_v24 = vsel %vm49_vm0, %v41_v23, 0  ;;  %v39_v31 = vpack.c.bf16 %v23_v30, %v22_v29  ;;  %v47_v34 = vpack.c.bf16 %v38_v33, %v38_v33  ;;  %v48_v35 = vld [vmem:[#allocation2] sm:$0x1]  ;;  %p175_p0 = scmp.ne.s32.totalorder %s134_s21, %s174_s1  ;;  %p180_p2 = scmp.lt.s32.totalorder %s178_s22, %s174_s1 }
   0xd   :  { %154 = vmatpush3.bf16.xpose.msra.mxu0 %v72_v8  ;;  %v57_v28 = vsel %vm49_vm0, %v40_v27, 0 }
   0xe   :  { %155 = vmatprep.subr.bf16.mxu0 %v196_v2  ;;  %v54_v32 = vsel %vm49_vm0, %v39_v31, 0  ;;  %p181_p3 = por %p180_p2, %p179_p1 }
  0x10   :  { %p182_p4 = pnand %p181_p3, %p175_p0 }
  0x15   :  { %156 = vmatpush3.bf16.xpose.msra.mxu0 %v69_v12 }
  0x16   :  { %157 = vmatprep.subr.bf16.mxu0 %v196_v2 }
  0x1d   :  { %158 = vmatpush3.bf16.xpose.msra.mxu0 %v66_v16 }
  0x1e   :  { %159 = vmatprep.subr.bf16.mxu0 %v196_v2 }
  0x25   :  { %160 = vmatpush3.bf16.xpose.msra.mxu0 %v63_v20 }
  0x26   :  { %161 = vmatprep.subr.bf16.mxu0 %v196_v2 }
  0x2d   :  { %162 = vmatpush3.bf16.xpose.msra.mxu0 %v60_v24 }
  0x2e   :  { %163 = vmatprep.subr.bf16.mxu0 %v196_v2 }
  0x35   :  { %164 = vmatpush3.bf16.xpose.msra.mxu0 %v57_v28 }
  0x36   :  { %165 = vmatprep.subr.bf16.mxu0 %v196_v2 }
  0x3d   :  { %166 = vmatpush3.bf16.xpose.msra.mxu0 %v54_v32 }
  0x44   :  { %168 = vmatmul.mubr.msk.bf16.vlgmr.msra.gmra.mxu0 %vm49_vm0, %v47_v34 }
 0x104   :  { %v111_v36 = vpop.f32.mrf.mxu0 }
 0x105   :  { %v117_v37 = vadd.f32 %v111_v36, %v48_v35 }
 0x106   :  { %v169_v38 = vpop.f32.mrf.mxu0 }
 0x107   :  { %118 = vst [vmem:[#allocation2] sm:$0x1] %v117_v37 }
 0x108   :  { %v114_v39 = vpop.f32.mrf.mxu0 }
 0x10a   :  { %v170_v40 = vpop.f32.mrf.mxu0 }
 0x10e   :  { %v122_v42 = vld [vmem:[#allocation2] sm:$0x1] }
 0x10f   :  { %v125_v43 = vadd.f32 %v124_v41, %v122_v42 }
 0x111   :  { %126 = vst [vmem:[#allocation4] sm:$0x1] %v125_v43 }
 0x112   :  { %185 = shalt.err (!%p182_p4)
}
 0x113   :  { %136 = dma.vmem_to_hbm [thread:$0]  %s134_s21, 16, %s288_s3, [#allocation5]  }
 0x114   :  { %194 = dma.done.wait [#allocation5], 16  }
 0x115   :  { %195 = vsyncadd [#allocation5], 4294967280 }
 0x116   :  { %140 = vsyncpa [#allocation5], 1 }

</bundles_post_ra>
